<compile_context>
chip_gen: v7x
topology: tpu7x:2x2x1
jax: 0.10.0
libtpu: 0.0.40
codegen_flags: <defaults>
</compile_context>

<pallas_src>
import jax
import jax.numpy as jnp
from jax.experimental import pallas as pl
from jax.experimental.pallas import tpu as pltpu


# --------------------------------- helpers -----------------------------------

def _round_up(x, m):
    return ((x + m - 1) // m) * m


def _largest_divisor_leq(n, cap):
    cap = max(1, min(n, cap))
    for d in range(cap, 0, -1):
        if n % d == 0:
            return d
    return 1


# ----------------------------- dense (no mask) path --------------------------

def _make_dense_kernel(has_bias, use_acc):
    def kernel(*refs):
        idx = 0
        x_ref = refs[idx]; idx += 1
        w_ref = refs[idx]; idx += 1
        b_ref = None
        if has_bias:
            b_ref = refs[idx]; idx += 1
        o_ref = refs[idx]; idx += 1
        acc_ref = refs[idx] if use_acc else o_ref  # accumulate in-place when f32

        k = pl.program_id(2)

        @pl.when(k == 0)
        def _():
            acc_ref[...] = jnp.zeros_like(acc_ref)

        acc_ref[...] += jnp.dot(x_ref[...], w_ref[...],
                                preferred_element_type=jnp.float32)

        if has_bias or use_acc:
            @pl.when(k == pl.num_programs(2) - 1)
            def _():
                res = acc_ref[...]
                if has_bias:
                    res = res + b_ref[...].astype(res.dtype)
                o_ref[...] = res.astype(o_ref.dtype)

    return kernel


def _pick_dense_tiles(M, F, N):
    # Rows (second-minor dim).
    if M <= 512:
        tm, M_pad = M, M                      # full-dim block, no padding
    else:
        tm = 512 if M >= 2048 else 256
        M_pad = _round_up(M, tm)

    # Contraction dim.
    if F <= 512:
        tk, F_pad = F, F
    elif F % 512 == 0:
        tk, F_pad = 512, F
    elif F % 256 == 0:
        tk, F_pad = 256, F
    else:
        F_pad = _round_up(F, 128)
        tk = 512 if F_pad % 512 == 0 else (256 if F_pad % 256 == 0 else 128)

    # Output columns (lane dim).
    if N <= 512:
        tn, N_pad = N, N
    elif N % 512 == 0:
        tn, N_pad = 512, N
    elif N % 256 == 0:
        tn, N_pad = 256, N
    else:
        N_pad = _round_up(N, 128)
        tn = 512 if N_pad % 512 == 0 else (256 if N_pad % 256 == 0 else 128)

    # v7x has 2 TensorCores: try to give the (i, j) parallel grid >= 2 blocks.
    if M_pad // tm == 1 and N_pad // tn == 1:
        if N_pad % 256 == 0:
            tn = N_pad // 2
        elif M_pad % 16 == 0:
            tm = M_pad // 2
    return tm, tk, tn, M_pad, F_pad, N_pad


def _dense_forward(x, weight, bias, cast_to_bf16=False):
    lead = x.shape[:-1]
    F = x.shape[-1]
    F_in, N = weight.shape
    assert F == F_in, (F, F_in)
    M = 1
    for d in lead:
        M *= int(d)
    out_dtype = x.dtype
    x2 = x.reshape(M, F)

    tm, tk, tn, M_pad, F_pad, N_pad = _pick_dense_tiles(M, F, N)

    if (M_pad, F_pad) != (M, F):
        x2 = jnp.pad(x2, ((0, M_pad - M), (0, F_pad - F)))
    w = weight
    if (F_pad, N_pad) != (F_in, N):
        # TODO(synk): pre-pad the weight once outside the hot path for repeated
        # calls (the pad is an extra HBM read+write of W per forward).
        w = jnp.pad(w, ((0, F_pad - F_in), (0, N_pad - N)))

    if cast_to_bf16:
        x2 = x2.astype(jnp.bfloat16)
        w = w.astype(jnp.bfloat16)

    use_acc = out_dtype != jnp.float32

    operands = [x2, w]
    in_specs = [
        pl.BlockSpec((tm, tk), lambda i, j, k: (i, k)),
        pl.BlockSpec((tk, tn), lambda i, j, k: (k, j)),
    ]
    if bias is not None:
        b2 = bias.reshape(1, N)
        if N_pad != N:
            b2 = jnp.pad(b2, ((0, 0), (0, N_pad - N)))
        operands.append(b2)
        in_specs.append(pl.BlockSpec((1, tn), lambda i, j, k: (0, j)))

    scratch = [pltpu.VMEM((tm, tn), jnp.float32)] if use_acc else []

    in_itemsize = x2.dtype.itemsize
    out_itemsize = jnp.dtype(out_dtype).itemsize
    footprint = (2 * (tm * tk + tk * tn) * in_itemsize     # double-buffered x/W
                 + 2 * tm * tn * out_itemsize               # double-buffered out
                 + (tm * tn * 4 if use_acc else 0)          # acc scratch
                 + 2 * tn * 4)                               # bias
    vmem_limit = int(min(max(2 * footprint, 32 * 1024 * 1024), 56 * 1024 * 1024))

    out = pl.pallas_call(
        _make_dense_kernel(bias is not None, use_acc),
        out_shape=jax.ShapeDtypeStruct((M_pad, N_pad), out_dtype),
        grid_spec=pltpu.PrefetchScalarGridSpec(
            num_scalar_prefetch=0,
            grid=(M_pad // tm, N_pad // tn, F_pad // tk),
            in_specs=in_specs,
            out_specs=pl.BlockSpec((tm, tn), lambda i, j, k: (i, j)),
            scratch_shapes=scratch,
        ),
        compiler_params=pltpu.CompilerParams(
            dimension_semantics=("parallel", "parallel", "arbitrary"),
            vmem_limit_bytes=vmem_limit),
    )(*operands)
    out = out[:M, :N]
    return out.reshape(*lead, N)


# ------------------------- masked path: W resident in VMEM -------------------

_MASKED_W_VMEM_BUDGET = 20 * 1024 * 1024   # v7x-safe (64 MiB physical VMEM)


def _make_masked_vmem_kernel(has_bias):
    def kernel(*refs):
        if has_bias:
            x_ref, m_ref, w_ref, b_ref, o_ref = refs
        else:
            x_ref, m_ref, w_ref, o_ref = refs
            b_ref = None

        bt, s, kk = x_ref.shape
        f_in = w_ref.shape[0]

        idx = m_ref[...].reshape(bt, kk)                               # (Bt, K)
        iota = jax.lax.broadcasted_iota(jnp.int32, (bt, kk, f_in), 2)
        onehot = (idx[:, :, None] == iota).astype(w_ref.dtype)        # (Bt, K, F)

        # Gather the selected weight rows on the MXU: Wg[b] = onehot[b] @ W.
        wg = jnp.dot(onehot.reshape(bt * kk, f_in), w_ref[...],
                     preferred_element_type=jnp.float32)
        wg = wg.reshape(bt, kk, -1).astype(w_ref.dtype)    # exact row selection

        out = jnp.einsum('bsk,bkn->bsn', x_ref[...], wg,
                         preferred_element_type=jnp.float32)
        if has_bias:
            out = out + b_ref[...].astype(out.dtype)
        o_ref[...] = out.astype(o_ref.dtype)

    return kernel


def _masked_forward_vmem(x, weight, bias, mask):
    B, S, K = x.shape
    F_in, N = weight.shape
    N_pad = _round_up(N, 128)               # lane-dense stores / MXU feed

    w = weight if N_pad == N else jnp.pad(weight, ((0, 0), (0, N_pad - N)))
    mask3 = mask.reshape(B, 1, K).astype(jnp.int32)   # trailing dims stay full

    # Fuse several batches per grid step but keep >= 2 steps for v7x's 2 TCs.
    per_batch_bytes = (S * K + K + S * N_pad) * 4
    bt = _largest_divisor_leq(B, max(1, (4 * 1024 * 1024) // max(per_batch_bytes, 1)))
    if B >= 2 and B // bt < 2:
        bt = _largest_divisor_leq(B, B // 2)
    grid = (B // bt,)

    operands = [x, mask3, w]
    in_specs = [
        pl.BlockSpec((bt, S, K), lambda b: (b, 0, 0)),
        pl.BlockSpec((bt, 1, K), lambda b: (b, 0, 0)),
        pl.BlockSpec((F_in, N_pad), lambda b: (0, 0)),    # W resident in VMEM
    ]
    if bias is not None:
        b2 = bias.reshape(1, N)
        if N_pad != N:
            b2 = jnp.pad(b2, ((0, 0), (0, N_pad - N)))
        operands.append(b2)
        in_specs.append(pl.BlockSpec((1, N_pad), lambda b: (0, 0)))

    w_bytes = F_in * N_pad * w.dtype.itemsize
    vmem_limit = int(min(max(2 * w_bytes + 8 * per_batch_bytes * bt + 8 * 1024 * 1024,
                             32 * 1024 * 1024), 56 * 1024 * 1024))

    out = pl.pallas_call(
        _make_masked_vmem_kernel(bias is not None),
        out_shape=jax.ShapeDtypeStruct((B, S, N_pad), x.dtype),
        grid_spec=pltpu.PrefetchScalarGridSpec(
            num_scalar_prefetch=0,
            grid=grid,
            in_specs=in_specs,
            out_specs=pl.BlockSpec((bt, S, N_pad), lambda b: (b, 0, 0)),
            scratch_shapes=[],
        ),
        compiler_params=pltpu.CompilerParams(
            dimension_semantics=("parallel",),
            vmem_limit_bytes=vmem_limit),
    )(*operands)
    return out[:, :, :N] if N_pad != N else out


# ---------------------- masked path fallback: HBM row gather -----------------
# Used only when W is too large to keep resident in VMEM.
# TODO(synk): double-buffer the (K, N) row gather across batches (prefetch
# batch b+1 while batch b computes) to hide the DMA latency in this fallback.

def _masked_hbm_gather(mask_ref, w_hbm, wg_ref, sem, base):
    n_rows = wg_ref.shape[0]
    copies = []
    for k in range(n_rows):                 # single shared DMA semaphore
        cp = pltpu.make_async_copy(
            w_hbm.at[pl.ds(mask_ref[base + k], 1), :],
            wg_ref.at[pl.ds(k, 1), :],
            sem)
        cp.start()
        copies.append(cp)
    for cp in copies:
        cp.wait()


def _masked_hbm_bias_kernel(mask_ref, x_ref, w_hbm, b_ref, o_ref, wg_ref, sem):
    b = pl.program_id(0)
    n_rows = wg_ref.shape[0]
    _masked_hbm_gather(mask_ref, w_hbm, wg_ref, sem.at[0], b * n_rows)
    out = jnp.dot(x_ref[0], wg_ref[...], preferred_element_type=jnp.float32)
    o_ref[0] = (out + b_ref[...].astype(out.dtype)).astype(o_ref.dtype)


def _masked_hbm_nobias_kernel(mask_ref, x_ref, w_hbm, o_ref, wg_ref, sem):
    b = pl.program_id(0)
    n_rows = wg_ref.shape[0]
    _masked_hbm_gather(mask_ref, w_hbm, wg_ref, sem.at[0], b * n_rows)
    out = jnp.dot(x_ref[0], wg_ref[...], preferred_element_type=jnp.float32)
    o_ref[0] = out.astype(o_ref.dtype)


def _masked_forward_hbm(x, weight, bias, mask):
    B, S, K = x.shape
    F_in, N = weight.shape
    mask_flat = mask.reshape(B * K).astype(jnp.int32)   # 1-D SMEM (no 2-D padding)

    operands = [mask_flat, x, weight]
    in_specs = [
        pl.BlockSpec((1, S, K), lambda b, m: (b, 0, 0)),
        pl.BlockSpec(memory_space=pl.ANY),               # W stays in HBM
    ]
    if bias is not None:
        operands.append(bias.reshape(1, N))
        in_specs.append(pl.BlockSpec((1, N), lambda b, m: (0, 0)))
        kernel = _masked_hbm_bias_kernel
    else:
        kernel = _masked_hbm_nobias_kernel

    return pl.pallas_call(
        kernel,
        out_shape=jax.ShapeDtypeStruct((B, S, N), x.dtype),
        grid_spec=pltpu.PrefetchScalarGridSpec(
            num_scalar_prefetch=1,                       # mask -> SMEM
            grid=(B,),
            in_specs=in_specs,
            out_specs=pl.BlockSpec((1, S, N), lambda b, m: (b, 0, 0)),
            scratch_shapes=[
                pltpu.VMEM((K, N), weight.dtype),        # gathered weight rows
                pltpu.SemaphoreType.DMA((1,)),           # one shared DMA sem
            ],
        ),
        compiler_params=pltpu.CompilerParams(
            dimension_semantics=("parallel",)),
    )(*operands)


def _masked_forward(x, weight, bias, mask):
    B, S, K = x.shape
    F_in, N = weight.shape
    assert mask.shape == (B, K), (mask.shape, (B, K))
    N_pad = _round_up(N, 128)
    w_bytes = F_in * N_pad * weight.dtype.itemsize
    if w_bytes <= _MASKED_W_VMEM_BUDGET:
        return _masked_forward_vmem(x, weight, bias, mask)
    return _masked_forward_hbm(x, weight, bias, mask)


# -------------------------------- public API ---------------------------------

def masked_linear(x, weight, bias=None, mask=None, cast_to_bf16=False):
    """Pallas implementation of MaskedLinear.forward.

    x:      (..., F) for the dense path, (B, S, K) for the masked path
    weight: (in_features, out_features)
    bias:   (out_features,) or None
    mask:   optional (B, K) int row indices into weight
    cast_to_bf16: dense-path-only flag to feed the bf16 MXU (f32 accumulation);
                  default False to keep torch-f32 numerics.
    """
    if mask is None:
        return _dense_forward(x, weight, bias, cast_to_bf16=cast_to_bf16)
    return _masked_forward(x, weight, bias, mask)


def reference(x, weight, bias, mask=None):
    hp = jax.lax.Precision.HIGHEST
    if mask is None:
        out = jnp.matmul(x, weight, precision=hp)
    else:
        out = jnp.stack(
            [jnp.matmul(x[i], weight[mask[i]], precision=hp)
             for i in range(x.shape[0])], axis=0)
    if bias is not None:
        out = out + bias
    return out


if __name__ == "__main__":
    key = jax.random.PRNGKey(0)
    B, S = 2, 8
    in_features, out_features = 32, 16
    K = 16  # number of selected weight rows in the masked path

    kw, kx1, kx2, km, kw2, kx3 = jax.random.split(key, 6)

    # Deterministic parameter init matching nn.init:
    #   weight: xavier_uniform_ on (in_features, out_features); bias: 0.0
    bound = (6.0 / (in_features + out_features)) ** 0.5
    weight = jax.random.uniform(kw, (in_features, out_features),
                                jnp.float32, -bound, bound)
    bias = jnp.zeros((out_features,), jnp.float32)

    # --- dense path: out = x @ W + b ---
    x = jax.random.normal(kx1, (B, S, in_features), jnp.float32)
    out = jax.block_until_ready(masked_linear(x, weight, bias))
    ref = reference(x, weight, bias)
    assert out.shape == (B, S, out_features)
    assert jnp.allclose(out, ref, atol=1e-5, rtol=1e-5)

    # --- dense path, bias=None ---
    out_nb = jax.block_until_ready(masked_linear(x, weight, None))
    assert jnp.allclose(out_nb, reference(x, weight, None), atol=1e-5, rtol=1e-5)

    # --- dense path, bf16-MXU flag (looser tolerance; numerics differ from f32) ---
    out_bf = jax.block_until_ready(masked_linear(x, weight, bias, cast_to_bf16=True))
    assert jnp.allclose(out_bf, ref, atol=5e-2, rtol=5e-2)

    # --- dense path, larger/tiled+padded shapes (exercises the tiled kernel) ---
    Fb, Nb = 640, 384
    bound_b = (6.0 / (Fb + Nb)) ** 0.5
    weight_b = jax.random.uniform(kw2, (Fb, Nb), jnp.float32, -bound_b, bound_b)
    bias_b = jnp.zeros((Nb,), jnp.float32)
    xb = jax.random.normal(kx3, (4, 160, Fb), jnp.float32)
    out_b = jax.block_until_ready(masked_linear(xb, weight_b, bias_b))
    ref_b = reference(xb, weight_b, bias_b)
    assert out_b.shape == (4, 160, Nb)
    assert jnp.allclose(out_b, ref_b, atol=1e-4, rtol=1e-4)

    # --- masked path: out[i] = x[i] @ W[mask[i]] + b ---
    xm = jax.random.normal(kx2, (B, S, K), jnp.float32)
    mask = jax.random.randint(km, (B, K), 0, in_features, jnp.int32)
    outm = jax.block_until_ready(masked_linear(xm, weight, bias, mask=mask))
    refm = reference(xm, weight, bias, mask)
    assert outm.shape == (B, S, out_features)
    assert jnp.allclose(outm, refm, atol=1e-5, rtol=1e-5)

    # --- masked path, bias=None ---
    outm_nb = jax.block_until_ready(masked_linear(xm, weight, None, mask=mask))
    assert jnp.allclose(outm_nb, reference(xm, weight, None, mask),
                        atol=1e-5, rtol=1e-5)

    print("KERNEL_OK")
</pallas_src>

<mosaic_0001>
module attributes {stable_mosaic.version = 11 : i64} {
  func.func @kernel(%arg0: i32, %arg1: i32, %arg2: i32, %arg3: memref<8x32xf32, #tpu.memory_space<vmem>>, %arg4: memref<32x16xf32, #tpu.memory_space<vmem>>, %arg5: memref<1x16xf32, #tpu.memory_space<vmem>>, %arg6: memref<8x16xf32, #tpu.memory_space<vmem>>) attributes {dimension_semantics = [#tpu.dimension_semantics<parallel>, #tpu.dimension_semantics<parallel>, #tpu.dimension_semantics<arbitrary>], iteration_bounds = array<i64: 2, 1, 1>, scalar_prefetch = 0 : i64, scratch_operands = 0 : i64, tpu.core_type = #tpu.core_type<tc>, window_params = [{transform_indices = @transform_0, window_bounds = array<i64: 8, 32>}, {transform_indices = @transform_1, window_bounds = array<i64: 32, 16>}, {transform_indices = @transform_2, window_bounds = array<i64: 1, 16>}, {transform_indices = @transform_3, window_bounds = array<i64: 8, 16>}]} {
    %c0_i32 = arith.constant 0 : i32
    %0 = arith.cmpi eq, %arg2, %c0_i32 : i32
    %1 = arith.extui %0 : i1 to i32
    %c0_i32_0 = arith.constant 0 : i32
    %2 = arith.cmpi ne, %1, %c0_i32_0 : i32
    scf.if %2 {
      %cst_10 = arith.constant 0.000000e+00 : f32
      %12 = vector.broadcast %cst_10 : f32 to vector<8x16xf32>
      %c0_11 = arith.constant 0 : index
      %c0_12 = arith.constant 0 : index
      %13 = vector.load %arg6[%c0_11, %c0_12] : memref<8x16xf32, #tpu.memory_space<vmem>>, vector<8x16xf32>
      tpu.vector_store %arg6[%c0_11, %c0_12], %12 {strides = array<i32>} : memref<8x16xf32, #tpu.memory_space<vmem>>, vector<8x16xf32>,
    } else {
    }
    %c0 = arith.constant 0 : index
    %c0_1 = arith.constant 0 : index
    %3 = vector.load %arg6[%c0, %c0_1] : memref<8x16xf32, #tpu.memory_space<vmem>>, vector<8x16xf32>
    %c0_2 = arith.constant 0 : index
    %c0_3 = arith.constant 0 : index
    %4 = vector.load %arg3[%c0_2, %c0_3] : memref<8x32xf32, #tpu.memory_space<vmem>>, vector<8x32xf32>
    %c0_4 = arith.constant 0 : index
    %c0_5 = arith.constant 0 : index
    %5 = vector.load %arg4[%c0_4, %c0_5] : memref<32x16xf32, #tpu.memory_space<vmem>>, vector<32x16xf32>
    %cst = arith.constant dense<0.000000e+00> : vector<8x16xf32>
    %6 = tpu.matmul %4, %5, %cst {dimension_numbers = #tpu.dot_dimension_numbers<[1], [0], [0], [1], [0, 0, 1, 1], [], []>} : vector<8x32xf32>, vector<32x16xf32>, vector<8x16xf32> -> vector<8x16xf32>
    %7 = arith.addf %3, %6 : vector<8x16xf32>
    %c0_6 = arith.constant 0 : index
    %c0_7 = arith.constant 0 : index
    %8 = vector.load %arg6[%c0_6, %c0_7] : memref<8x16xf32, #tpu.memory_space<vmem>>, vector<8x16xf32>
    tpu.vector_store %arg6[%c0_6, %c0_7], %7 {strides = array<i32>} : memref<8x16xf32, #tpu.memory_space<vmem>>, vector<8x16xf32>,
    %c0_i32_8 = arith.constant 0 : i32
    %9 = arith.cmpi eq, %arg2, %c0_i32_8 : i32
    %10 = arith.extui %9 : i1 to i32
    %c0_i32_9 = arith.constant 0 : i32
    %11 = arith.cmpi ne, %10, %c0_i32_9 : i32
    scf.if %11 {
      %c0_10 = arith.constant 0 : index
      %c0_11 = arith.constant 0 : index
      %12 = vector.load %arg6[%c0_10, %c0_11] : memref<8x16xf32, #tpu.memory_space<vmem>>, vector<8x16xf32>
      %c0_12 = arith.constant 0 : index
      %c0_13 = arith.constant 0 : index
      %13 = vector.load %arg5[%c0_12, %c0_13] : memref<1x16xf32, #tpu.memory_space<vmem>>, vector<1x16xf32>
      %14 = vector.broadcast %13 : vector<1x16xf32> to vector<8x16xf32>
      %15 = arith.addf %12, %14 : vector<8x16xf32>
      %c0_14 = arith.constant 0 : index
      %c0_15 = arith.constant 0 : index
      %16 = vector.load %arg6[%c0_14, %c0_15] : memref<8x16xf32, #tpu.memory_space<vmem>>, vector<8x16xf32>
      tpu.vector_store %arg6[%c0_14, %c0_15], %15 {strides = array<i32>} : memref<8x16xf32, #tpu.memory_space<vmem>>, vector<8x16xf32>,
    } else {
    }
    return
  }
  func.func @transform_0(%arg0: i32, %arg1: i32, %arg2: i32) -> (i32, i32) {
    %c0_i32 = arith.constant 0 : i32
    return %arg0, %arg2 : i32, i32
  }
  func.func @transform_1(%arg0: i32, %arg1: i32, %arg2: i32) -> (i32, i32) {
    %c0_i32 = arith.constant 0 : i32
    return %arg2, %arg1 : i32, i32
  }
  func.func @transform_2(%arg0: i32, %arg1: i32, %arg2: i32) -> (i32, i32) {
    %c0_i32 = arith.constant 0 : i32
    %c0_i32_0 = arith.constant 0 : i32
    return %c0_i32, %arg1 : i32, i32
  }
  func.func @transform_3(%arg0: i32, %arg1: i32, %arg2: i32) -> (i32, i32) {
    %c0_i32 = arith.constant 0 : i32
    return %arg0, %arg1 : i32, i32
  }
}

</mosaic_0001>

<bundles_post_ra>
// kernel: tpu_custom_call.1
= control target key start
LH: loop header
LB: loop body
LE: loop exit
PB: predicated region body
PF: predicated region fallthrough
CT: control target
= control target key end

     0   :  { %8 = vsyncpa [#allocation3], 0  ;;  %s799_s0 = inlined_call_operand.vmem [shape: f32[16,32], index: 0, kind: input, shape index: {}]   ;;  %s800_s1 = inlined_call_operand.vmem [shape: f32[32,16], index: 1, kind: input, shape index: {}]   ;;  %s801_s2 = inlined_call_operand.vmem [shape: f32[1,16], index: 2, kind: input, shape index: {}]   ;;  %s802_s3 = inlined_call_operand.hbm [shape: f32[16,16], index: 3, kind: output, shape index: {}]  }
   0x1   :  { %10 = vsyncpa [#allocation3 + $0x1], 0  ;;  %s665_s12 = smov 0   ;;  %s667_s13 = smov 0  }
   0x2   :  { %s669_s14 = smov 0   ;;  %s671_s15 = smov 0  }
   0x3   :  { %s673_s16 = smov 0   ;;  %s675_s17 = smov 0  }
   0x4 LB: > { %s466_s18 = sadd.s32 4294967295, %s639_s17   ;;  %s467_s19 = sadd.s32 4294967294, %s639_s17   ;;  %s639_s17 = sphi %s675_s17, %s16_s17   ;;  %s635_s16 = sphi %s673_s16, %s809_s16   ;;  %s631_s15 = sphi %s671_s15, %s808_s15   ;;  %s627_s14 = sphi %s669_s14, %s807_s14   ;;  %s623_s13 = sphi %s667_s13, %s806_s13   ;;  %s619_s12 = sphi %s665_s12, %s805_s12  }
   0x5   : > { %s35_s20 = sadd.s32 1, %s635_s16  ;;  %s126_s21 = sadd.s32 1, %s627_s14 }
   0x6   : > { %p37_p0 = scmp.ge.s32.totalorder %s35_s20, 2  ;;  %p136_p1 = scmp.ne.s32.totalorder %s627_s14, %s623_s13 }
   0x7   : > { %p137_p2 = scmp.eq.s32.totalorder %s466_s18, 1  ;;  %p142_p3 = scmp.ne.s32.totalorder %s623_s13, %s619_s12 }
   0x8   : > { %s811_s20 = smov (%p37_p0, %s35_s20), 0  ;;  %p143_p5 = scmp.eq.s32.totalorder %s467_s19, 1 }
   0x9   : > { %p705_p4 = por %p137_p2, %p136_p1  ;;  %s121_s23 = ssub.s32 %s635_s16, %s811_s20 }
   0xa   : > { %p472_p6 = scmp.ge.s32.totalorder %s639_s17, 1  ;;  %p124_p7 = scmp.eq.s32.totalorder %s121_s23, 0 }
   0xb   : > { %p712_p8 = por %p143_p5, %p142_p3  ;;  %p189_p9 = scmp.lt.s32.totalorder %s639_s17, 3 }
   0xc   : > { %s718_s25 = scalar_select %p124_p7, %s627_s14, %s126_s21  }
   0xd   : > { %p190_p10 = pnand %p472_p6, %p189_p9 }
   0xe   : > { %v253_v0 = vld [vmem:[%s800_s1] sm:$0xff] (!%p190_p10)  ;;  %v254_v1 = vld [vmem:[%s800_s1 + $0x8] sm:$0xff] (!%p190_p10)  ;;  %v255_v2 = vld [vmem:[%s800_s1 + $0x10] sm:$0xff] (!%p190_p10)  ;;  %s223_s5 = sand.u32 (!%p190_p10), 1, %s623_s13   ;;  %vm249_vm0 = vcmask (!%p190_p10), 130048   ;;  %v641_v3 = vmov (!%p190_p10), 0.0|0.0  }
   0xf   : > { %193 = sbr.rel (%p190_p10) target bundleno = 265 (0x109), region = 32  ;;  %497 = vmatprep.subr.bf16.mxu0 (!%p190_p10), %v641_v3  ;;  %v498_v4 = vpack.c.bf16 (!%p190_p10), %v254_v1, %v253_v0  ;;  %v256_v5 = vld [vmem:[%s800_s1 + $0x18] sm:$0xff] (!%p190_p10)  ;;  %s473_s8 = sshll.u32 (!%p190_p10), %s223_s5, 3  ;;  %vm642_vm1 = vmmov (!%p190_p10), 0   ;;  %v643_v6 = vmov (!%p190_p10), 0.0   ;;  %vm257_vm2 = vcmask (!%p190_p10), 261120  }
  0x10   : > { %p226_p11 = scmp.lt.s32.totalorder (!%p190_p10), %s631_s15, 1  ;;  %494 = vmatprep.mubr.msk.f32.mxu0 (!%p190_p10), %vm642_vm1, %v643_v6  ;;  %v501_v7 = vpack.c.bf16 (!%p190_p10), %v256_v5, %v255_v2  ;;  %s225_s9 = scalar_lea.vmem (!%p190_p10), [#allocation2], %s473_s8  ;;  %v476_v13 = vld [vmem:[%s801_s2] ss:$0 sm:$0xff] (!%p190_p10) }
  0x11   : > { %499 = vmatpush3.bf16.msra.mxu0 (!%p190_p10), %v498_v4  ;;  %250 = vst.msk [vmem:[%s225_s9] sm:$0xff] (!%p190_p10), %vm249_vm0, %v643_v6  ;;  %s478_s27 = sshll.u32 (!%p190_p10), %s631_s15, 7  ;;  %s362_s28 = sshll.u32 (!%p190_p10), %s225_s9, 4  ;;  %s751_s28 = int_to_ptr.vmem [resolvable:$true] %s362_s28 }
  0x12   : > { %500 = vmatprep.subr.bf16.mxu0 (!%p190_p10), %v641_v3  ;;  %s749_s4 = scalar_lea.hbm (!%p190_p10), %s802_s3, %s478_s27  ;;  %s348_s6 = scalar_lea.sflag (!%p190_p10), [#allocation3], %s223_s5 }
  0x13   : > { %s561_s7 = scalar_lea.vmem (!%p190_p10), %s751_s28, 128 }
  0x14   : > { %p562_p12 = scmp.ne.s32.totalorder (!%p190_p10), %s751_s28, %s561_s7 }
  0x15   : > { %502 = vmatpush3.bf16.msra.mxu0 (!%p190_p10), %v501_v7 }
  0x16   : > { %s227_s10 = scalar_select %p226_p11, %s631_s15, 1 }
  0x17   : > { %p563_p13 = pnand %p562_p12, %p705_p4  ;;  %s644_s15 = smov [#allocation2]  }
  0x18   : > { %s474_s11 = sshll.u32 %s227_s10, 3  ;;  %v251_v9 = vld [vmem:[%s225_s9] sm:$0xff]  ;;  %s565_s8 = sshll.u32 %s644_s15, 4  ;;  %s566_s8 = int_to_ptr.vmem [resolvable:$false] %s565_s8 }
  0x19   : > { %s232_s21 = scalar_lea.vmem %s799_s0, %s474_s11  ;;  %p564_p0 = pneg %p563_p13 }
  0x1a   : > { %v252_v8 = vld [vmem:[%s232_s21] sm:$0xff]  ;;  %s567_s10 = scalar_lea.vmem %s566_s8, 256  ;;  %p568_p1 = scmp.lt.s32.totalorder %s751_s28, %s566_s8 }
  0x1b   : > { %495 = vmatmul.mubr.msk.f32.vlgmr.msra.gmra.mrb[0].mxu0 %vm257_vm2, %v252_v8  ;;  %p569_p2 = scmp.lt.s32.totalorder %s567_s10, %s561_s7 }
  0x1d   : > { %p570_p3 = por %p569_p2, %p568_p1 }
  0x1f   : > { %p571_p5 = pnand %p570_p3, %p564_p0 }
  0xee   : > { %v327_v10 = vpop.f32.mrb[0].mxu0 }
  0xef   : > { %v331_v11 = vadd.f32 %v327_v10, %v251_v9  ;;  %v496_v12 = vpop.f32.mrb[1].mxu0 }
  0xf1   : > { %333 = vst.msk [vmem:[%s225_s9] sm:$0xff] %vm249_vm0, %v331_v11 }
  0xf8   : > { %v337_v14 = vld [vmem:[%s225_s9] sm:$0xff] }
  0xf9   : > { %v345_v15 = vadd.f32 %v476_v13, %v337_v14 }
  0xfb   : > { %346 = vst.msk [vmem:[%s225_s9] sm:$0xff] %vm249_vm0, %v345_v15 }
  0xfc   : > { %574 = shalt.err (!%p571_p5)
}
  0xfd   : > { %s575_s5 = scalar_lea.hbm %s749_s4, 128  ;;  %s579_s18 = scalar_lea.hbm %s802_s3, 256 }
  0xfe   : > { %p576_p6 = scmp.ne.s32.totalorder %s749_s4, %s575_s5  ;;  %p580_p10 = scmp.lt.u32.totalorder %s749_s4, %s802_s3 }
  0xff   : > { %p581_p11 = scmp.lt.u32.totalorder %s579_s18, %s575_s5  ;;  %p583_p13 = scmp.lt.u32.totalorder %s575_s5, %s749_s4 }
 0x100   : > { %p577_p7 = pnand %p576_p6, %p705_p4 }
 0x101   : > { %p582_p12 = por %p581_p11, %p580_p10 }
 0x102   : > { %p578_p9 = pneg %p577_p7 }
 0x103   : > { %p584_p0 = por %p583_p13, %p582_p12 }
 0x105   : > { %p585_p1 = pnand %p584_p0, %p578_p9 }
 0x107   : > { %588 = shalt.err (!%p585_p1)
}
 0x108   : > { %503 = dma.vmem_to_hbm [thread:$0]  (%p705_p4), %s751_s28, 128, %s749_s4, %s348_s6  }
 0x109 PF: > { %p509_p2 = scmp.ge.s32.totalorder %s639_s17, 2  ;;  %s374_s23 = sand.u32 1, %s619_s12  }
 0x10a   : > { %s375_s26 = scalar_lea.sflag [#allocation3], %s374_s23 }
 0x10b   : > { %p506_p3 = pnand %p509_p2, %p712_p8 }
 0x10d   : > { %614 = dma.done.wait (!%p506_p3), %s375_s26, 128  }
 0x10e   : > { %616 = vsyncadd (!%p506_p3), %s375_s26, 4294967168  ;;  %s16_s17 = sadd.s32 1, %s639_s17   ;;  %s805_s12 = smov %s623_s13 }
 0x10f   : > { %p13_p5 = scmp.ge.s32.totalorder %s16_s17, 4   ;;  %s806_s13 = smov %s627_s14 }
 0x110   : > { %s807_s14 = smov %s718_s25  ;;  %s808_s15 = smov %s635_s16 }
 0x111   : > { %s809_s16 = smov %s811_s20  ;;  %15 = sbr.rel (!%p13_p5) target bundleno = 4 (0x4), region = 81 }
 0x118   :  { %380 = vsyncpa [#allocation3], 1 }
 0x119   :  { %382 = vsyncpa [#allocation3 + $0x1], 1 }

</bundles_post_ra>
